<compile_context>
chip_gen: v5e
topology: v5e:2x2
jax: 0.10.0
libtpu: 0.0.40
codegen_flags: <defaults>
</compile_context>

<pallas_src>
import functools
import math

import numpy as np
import jax
import jax.numpy as jnp
from jax import lax
from jax.experimental import pallas as pl
from jax.experimental.pallas import tpu as pltpu

_LANE = 128
_BLOCK_TARGET_BYTES = 4 << 20     # ~4 MiB per block (see header comment)

# ----------------------------------------------------------------------------
# Polynomial coefficients (Abramowitz & Stegun 9.8.1 - 9.8.4) for i0e / i1e.
# ----------------------------------------------------------------------------
_I0_SMALL = (1.0, 3.5156229, 3.0899424, 1.2067492, 0.2659732, 0.0360768,
             0.0045813)                                   # poly in (x/3.75)^2
_I0_LARGE = (0.39894228, 0.01328592, 0.00225319, -0.00157565, 0.00916281,
             -0.02057706, 0.02635537, -0.01647633, 0.00392377)  # poly in 3.75/x
_I1_SMALL = (0.5, 0.87890594, 0.51498869, 0.15084934, 0.02658733, 0.00301532,
             0.00032411)
_I1_LARGE = (0.39894228, -0.03988024, -0.00362018, 0.00163801, -0.01031555,
             0.02282967, -0.02895312, 0.01787654, -0.00420059)

_GENERAL_CUT = 7.5        # z-cutoff between power series and asymptotic branch
_INV_375 = 1.0 / 3.75


# ----------------------------------------------------------------------------
# Host-side coefficient generation (trace time, pure Python/numpy).
# ----------------------------------------------------------------------------
def _series_coeffs(v, nterms):
    """c_k = 1 / (k! * Gamma(v + k + 1)) for the small-z power series."""
    out = []
    for k in range(nterms):
        a = v + k + 1.0
        if a <= 0.0 and abs(a - round(a)) < 1e-12:
            out.append(0.0)                 # 1/Gamma(non-positive integer) == 0
            continue
        lg = math.lgamma(k + 1) + math.lgamma(a)   # lgamma returns log|Gamma|
        sign = -1.0 if (a < 0.0 and (math.ceil(-a) % 2 == 1)) else 1.0
        out.append(sign * math.exp(-lg) if lg < 700.0 else 0.0)
    return tuple(out)


def _asym_coeffs(v, nterms):
    """c_k = (-1)^k prod_{j=1..k} (4v^2 - (2j-1)^2) / (8^k k!)."""
    mu = 4.0 * v * v
    coeffs = [1.0]
    c = 1.0
    for k in range(1, nterms):
        c *= -(mu - (2 * k - 1) ** 2) / (8.0 * k)
        coeffs.append(c)
    return tuple(coeffs)


def _refit_poly(coeffs, lo, hi, degree):
    """Least-squares refit of sum coeffs[k] x^k by a lower-degree polynomial on
    [lo, hi], sampled at Chebyshev nodes (near-minimax for smooth targets).
    Used for bf16/f16 outputs, which only carry ~8-11 mantissa bits."""
    n = len(coeffs)
    if degree >= n - 1:
        return tuple(float(c) for c in coeffs)
    x = 0.5 * (lo + hi) + 0.5 * (hi - lo) * np.cos(
        np.pi * (np.arange(512) + 0.5) / 512.0)
    y = np.polyval(list(reversed(coeffs)), x)
    fit = np.polyfit(x, y, degree)
    return tuple(float(c) for c in reversed(fit.tolist()))


# ----------------------------------------------------------------------------
# In-kernel elementwise math (pure VPU/EUP/XLU work, f32 internally).
# ----------------------------------------------------------------------------
def _poly(coeffs, x):
    """Horner evaluation of sum_k coeffs[k] * x**k (throughput-bound kernel:
    minimize term count, serial chain length is irrelevant)."""
    acc = jnp.full_like(x, coeffs[-1])
    for c in reversed(coeffs[:-1]):
        acc = acc * x + c
    return acc


def _i0e(z, small_c, large_c):
    ax = jnp.abs(z)
    t = ax * _INV_375
    small = _poly(small_c, t * t) * jnp.exp(-ax)
    axl = jnp.maximum(ax, 3.75)
    large = _poly(large_c, 3.75 * pl.reciprocal(axl, approx=True)) * lax.rsqrt(axl)
    return jnp.where(ax < 3.75, small, large)


def _i1e(z, small_c, large_c):
    ax = jnp.abs(z)
    sgn = jnp.sign(z)
    t = ax * _INV_375
    small = ax * _poly(small_c, t * t) * jnp.exp(-ax)
    axl = jnp.maximum(ax, 3.75)
    large = _poly(large_c, 3.75 * pl.reciprocal(axl, approx=True)) * lax.rsqrt(axl)
    return sgn * jnp.where(ax < 3.75, small, large)


def _int_pow(x, e):
    """x**e for static int e >= 1: exponentiation by squaring unrolled at trace
    time, no ones-like init and no redundant final squaring."""
    acc = None
    while True:
        if e & 1:
            acc = x if acc is None else acc * x
        e >>= 1
        if e == 0:
            return acc
        x = x * x


def _scaled_prefactor(z, v):
    """(z/2)^v * exp(-z) for z >= 0."""
    half = 0.5 * z
    two_v = 2.0 * float(v)
    n2 = int(round(two_v))
    # Half-integer / integer orders (the vMF case v = m/2 - 1): integer power
    # chain + one sqrt instead of an EUP log.  Capped at n2 <= 64 so the
    # intermediate (z/2)^v cannot overflow f32 for z below the series cutoff.
    if v > 0.0 and abs(two_v - n2) < 1e-9 and 0 < n2 <= 64:
        p = _int_pow(half, n2 // 2) if n2 >= 2 else None
        if n2 & 1:
            s = jnp.sqrt(half)
            p = s if p is None else p * s
        return p * jnp.exp(-z)
    # General real order: log-exp form (clamp avoids log(0)).
    return jnp.exp(v * jnp.log(jnp.maximum(half, 1e-30)) - z)


def _ive_series(z, v, series_c):
    """Small-z branch: ive = (z/2)^v exp(-z) * sum_k c_k (z^2/4)^k   (z >= 0)."""
    u = 0.25 * z * z
    return _scaled_prefactor(z, v) * _poly(series_c, u)


def _ive_asym(z, asym_c, cut):
    """Large-z branch: ive ~ (2*pi*z)^(-1/2) * sum_k c_k z^(-k)."""
    zl = jnp.maximum(z, cut)
    inv = pl.reciprocal(zl, approx=True)
    return _poly(asym_c, inv) * lax.rsqrt((2.0 * math.pi) * zl)


# ----------------------------------------------------------------------------
# Pallas kernels
# ----------------------------------------------------------------------------
def _i01e_kernel(z_ref, o_ref, *, order, small_c, large_c):
    z = z_ref[...].astype(jnp.float32)
    out = _i0e(z, small_c, large_c) if order == 0 else _i1e(z, small_c, large_c)
    o_ref[...] = out.astype(o_ref.dtype)


def _ive_general_kernel(z_ref, o_ref, *, v, series_c, asym_c, cut):
    # TODO(synk): negative z is clamped rather than reflected in the general-
    # order path (same real-order usage restriction as the reference module).
    z = jnp.maximum(z_ref[...].astype(jnp.float32), 0.0)

    # Per-block regime detection: min/max reduces run on the XLU (off the
    # binding VALU slot); homogeneous blocks skip the unused branch entirely.
    all_large = jnp.min(z) >= cut
    all_small = jnp.max(z) < cut

    @pl.when(all_large)
    def _():
        o_ref[...] = _ive_asym(z, asym_c, cut).astype(o_ref.dtype)

    @pl.when(all_small)
    def _():
        o_ref[...] = _ive_series(z, v, series_c).astype(o_ref.dtype)

    @pl.when(jnp.logical_not(jnp.logical_or(all_large, all_small)))
    def _():
        out = jnp.where(z < cut,
                        _ive_series(z, v, series_c),
                        _ive_asym(z, asym_c, cut))
        o_ref[...] = out.astype(o_ref.dtype)


# ----------------------------------------------------------------------------
# Wrapper: layout, block sizing, pallas_call
# ----------------------------------------------------------------------------
def _num_tensorcores():
    """TensorCores per device: v4/v5p/v7x expose a 2-TC megacore as one device."""
    try:
        kind = jax.devices()[0].device_kind.lower()
    except Exception:                      # e.g. interpret mode / no backend
        return 1
    return 2 if any(t in kind for t in ("v4", "v5p", "v7")) else 1


def _choose_block_rows(rows, itemsize, num_tc):
    """Pick the block row count for the (rows, 128) slab.

    ~4 MiB blocks amortize the ~0.35us per-grid-step overhead to <2% while the
    double-buffered in+out footprint (4 blocks, ~16 MiB) stays well inside the
    32 MiB scoped-VMEM limit on every generation (v7x physical VMEM is 64 MiB;
    v5e's 16 MiB default is raised via vmem_limit_bytes).  On multi-TC chips
    the grid step count is kept a multiple of the core count so the
    ("parallel",) axis splits evenly; single-TC chips get no forced split."""
    sub = max(8, 32 // itemsize)            # (8,128) f32 / (16,128) bf16 tiles
    target = max(sub, (_BLOCK_TARGET_BYTES // (_LANE * itemsize)) // sub * sub)
    if rows <= target:
        if num_tc > 1 and rows >= 2 * sub:
            return pl.cdiv(pl.cdiv(rows, num_tc), sub) * sub
        return rows                          # one full-array block (always legal)
    block = target
    if num_tc > 1:
        steps = pl.cdiv(rows, block)
        if steps % num_tc:
            steps += num_tc - steps % num_tc
            block = pl.cdiv(pl.cdiv(rows, steps), sub) * sub
    return block


def ive(v, z):
    """Elementwise ive(v, z) == scipy.special.ive(v, z) (forward only)."""
    v = float(v)
    orig_shape = z.shape
    orig_dtype = z.dtype

    # Keep HBM I/O in the native floating dtype; math runs in f32 inside.
    if jnp.issubdtype(orig_dtype, jnp.floating):
        io_dtype = orig_dtype
    else:
        io_dtype = jnp.float32
        z = z.astype(io_dtype)

    # I_{-n}(z) == I_n(z) for integer n.
    if v < 0.0 and abs(v - round(v)) < 1e-9:
        v = abs(v)

    total = int(np.prod(orig_shape)) if len(orig_shape) else 1
    itemsize = jnp.dtype(io_dtype).itemsize
    lowp = itemsize <= 2

    # Lane-dense (rows, 128) slab.  The contiguous flatten is a free bitcast;
    # a real pad/copy only happens when total is not a multiple of 128.  Row
    # raggedness is left to Pallas boundary-block handling (reads clipped,
    # out-of-bounds writes masked) instead of padding to a grid multiple.
    rows = pl.cdiv(total, _LANE)
    zf = jnp.reshape(z, (-1,))
    ragged = rows * _LANE != total
    if ragged:
        zf = jnp.pad(zf, (0, rows * _LANE - total), constant_values=1.0)
    z2 = zf.reshape(rows, _LANE)

    num_tc = _num_tensorcores()
    block_rows = _choose_block_rows(rows, itemsize, num_tc)
    grid_steps = pl.cdiv(rows, block_rows)

    if np.isclose(v, 0.0) or np.isclose(v, 1.0):
        order = 0 if np.isclose(v, 0.0) else 1
        small_c = _I0_SMALL if order == 0 else _I1_SMALL
        large_c = _I0_LARGE if order == 0 else _I1_LARGE
        if lowp:                       # bf16/f16: shorter near-minimax refits
            small_c = _refit_poly(small_c, 0.0, 1.0, 4)
            large_c = _refit_poly(large_c, 0.0, 1.0, 4)
        kernel = functools.partial(_i01e_kernel, order=order,
                                   small_c=small_c, large_c=large_c)
    else:
        n_series = 10 if lowp else 14
        n_asym = 6 if lowp else 10
        kernel = functools.partial(
            _ive_general_kernel, v=v,
            series_c=_series_coeffs(v, n_series),
            asym_c=_asym_coeffs(v, n_asym),
            cut=_GENERAL_CUT)

    out2 = pl.pallas_call(
        kernel,
        out_shape=jax.ShapeDtypeStruct((rows, _LANE), io_dtype),
        grid_spec=pltpu.PrefetchScalarGridSpec(
            num_scalar_prefetch=0,
            grid=(grid_steps,),
            in_specs=[pl.BlockSpec((block_rows, _LANE), lambda i: (i, 0))],
            out_specs=pl.BlockSpec((block_rows, _LANE), lambda i: (i, 0)),
        ),
        compiler_params=pltpu.CompilerParams(
            dimension_semantics=("parallel",),
            vmem_limit_bytes=32 * 1024 * 1024),
    )(z2)

    out = out2.reshape(-1)
    if ragged:
        out = out[:total]
    return out.reshape(orig_shape)


class Ive:
    """Pallas analogue of the PyTorch `Ive` nn.Module (forward only)."""

    def __init__(self, v):
        self.v = v

    def __call__(self, z):
        return ive(self.v, z)
    # TODO(synk): backward pass (grad * (ive(v-1, z) - ive(v, z)*(v+z)/z)) is
    # not wired up as a custom_vjp; only the forward is required here.


if __name__ == "__main__":
    key = jax.random.PRNGKey(0)
    # z > 0 (vMF concentration), spanning both the series and asymptotic regimes.
    z = jax.random.uniform(key, (2, 4, 16, 16), dtype=jnp.float32,
                           minval=0.1, maxval=20.0)

    # v = 0 and v = 1 paths: cross-check against jax.scipy.special (Cephes).
    y0 = jax.block_until_ready(Ive(0.0)(z))
    y1 = jax.block_until_ready(Ive(1.0)(z))
    np.testing.assert_allclose(np.asarray(y0),
                               np.asarray(jax.scipy.special.i0e(z)),
                               rtol=1e-3, atol=1e-5)
    np.testing.assert_allclose(np.asarray(y1),
                               np.asarray(jax.scipy.special.i1e(z)),
                               rtol=1e-3, atol=1e-5)

    # General (non-integer) order, the typical vMF case v = m/2 - 1.
    y_gen = jax.block_until_ready(Ive(2.5)(z))
    assert np.all(np.isfinite(np.asarray(y_gen))) and np.all(np.asarray(y_gen) >= 0.0)

    # Ragged element count exercises the lane-pad path + final slice.
    z_rag = jax.random.uniform(key, (3, 5, 7), dtype=jnp.float32,
                               minval=0.1, maxval=20.0)
    y_rag = jax.block_until_ready(Ive(0.0)(z_rag))
    np.testing.assert_allclose(np.asarray(y_rag),
                               np.asarray(jax.scipy.special.i0e(z_rag)),
                               rtol=1e-3, atol=1e-5)

    # bf16 path exercises native-dtype I/O, (16,128) tiles and refit coeffs.
    y_bf16 = jax.block_until_ready(Ive(0.0)(z.astype(jnp.bfloat16)))
    assert y_bf16.dtype == jnp.bfloat16
    np.testing.assert_allclose(np.asarray(y_bf16, dtype=np.float32),
                               np.asarray(jax.scipy.special.i0e(z)),
                               rtol=2e-2, atol=1e-3)

    print("KERNEL_OK")
</pallas_src>

<mosaic_0001>
module attributes {stable_mosaic.version = 11 : i64} {
  func.func @_i01e_kernel(%arg0: i32, %arg1: memref<16x128xf32, #tpu.memory_space<vmem>>, %arg2: memref<16x128xf32, #tpu.memory_space<vmem>>) attributes {dimension_semantics = [#tpu.dimension_semantics<parallel>], iteration_bounds = array<i64: 1>, scalar_prefetch = 0 : i64, scratch_operands = 0 : i64, tpu.core_type = #tpu.core_type<tc>, window_params = [{transform_indices = @transform_0, window_bounds = array<i64: 16, 128>}, {transform_indices = @transform_1, window_bounds = array<i64: 16, 128>}]} {
    %c0 = arith.constant 0 : index
    %c0_0 = arith.constant 0 : index
    %0 = vector.load %arg1[%c0, %c0_0] : memref<16x128xf32, #tpu.memory_space<vmem>>, vector<16x128xf32>
    %1 = math.absf %0 : vector<16x128xf32>
    %cst = arith.constant 0.266666681 : f32
    %2 = vector.broadcast %cst : f32 to vector<16x128xf32>
    %3 = arith.mulf %1, %2 : vector<16x128xf32>
    %4 = arith.mulf %3, %3 : vector<16x128xf32>
    %cst_1 = arith.constant 4.581300e-03 : f32
    %5 = vector.broadcast %cst_1 : f32 to vector<16x128xf32>
    %6 = arith.mulf %5, %4 : vector<16x128xf32>
    %cst_2 = arith.constant 3.607680e-02 : f32
    %7 = vector.broadcast %cst_2 : f32 to vector<16x128xf32>
    %8 = arith.addf %6, %7 : vector<16x128xf32>
    %9 = arith.mulf %8, %4 : vector<16x128xf32>
    %cst_3 = arith.constant 0.26597321 : f32
    %10 = vector.broadcast %cst_3 : f32 to vector<16x128xf32>
    %11 = arith.addf %9, %10 : vector<16x128xf32>
    %12 = arith.mulf %11, %4 : vector<16x128xf32>
    %cst_4 = arith.constant 1.2067492 : f32
    %13 = vector.broadcast %cst_4 : f32 to vector<16x128xf32>
    %14 = arith.addf %12, %13 : vector<16x128xf32>
    %15 = arith.mulf %14, %4 : vector<16x128xf32>
    %cst_5 = arith.constant 3.08994246 : f32
    %16 = vector.broadcast %cst_5 : f32 to vector<16x128xf32>
    %17 = arith.addf %15, %16 : vector<16x128xf32>
    %18 = arith.mulf %17, %4 : vector<16x128xf32>
    %cst_6 = arith.constant 3.51562285 : f32
    %19 = vector.broadcast %cst_6 : f32 to vector<16x128xf32>
    %20 = arith.addf %18, %19 : vector<16x128xf32>
    %21 = arith.mulf %20, %4 : vector<16x128xf32>
    %cst_7 = arith.constant 1.000000e+00 : f32
    %22 = vector.broadcast %cst_7 : f32 to vector<16x128xf32>
    %23 = arith.addf %21, %22 : vector<16x128xf32>
    %cst_8 = arith.constant 0.000000e+00 : f32
    %24 = vector.broadcast %cst_8 : f32 to vector<16x128xf32>
    %25 = arith.subf %24, %1 : vector<16x128xf32>
    %26 = math.exp %25 : vector<16x128xf32>
    %27 = arith.mulf %23, %26 : vector<16x128xf32>
    %cst_9 = arith.constant 3.750000e+00 : f32
    %28 = vector.broadcast %cst_9 : f32 to vector<16x128xf32>
    %29 = arith.maximumf %1, %28 : vector<16x128xf32>
    %30 = tpu.reciprocal %29 {approx = true} : vector<16x128xf32> -> vector<16x128xf32>
    %cst_10 = arith.constant 3.750000e+00 : f32
    %31 = vector.broadcast %cst_10 : f32 to vector<16x128xf32>
    %32 = arith.mulf %31, %30 : vector<16x128xf32>
    %cst_11 = arith.constant 3.923770e-03 : f32
    %33 = vector.broadcast %cst_11 : f32 to vector<16x128xf32>
    %34 = arith.mulf %33, %32 : vector<16x128xf32>
    %cst_12 = arith.constant -0.0164763294 : f32
    %35 = vector.broadcast %cst_12 : f32 to vector<16x128xf32>
    %36 = arith.addf %34, %35 : vector<16x128xf32>
    %37 = arith.mulf %36, %32 : vector<16x128xf32>
    %cst_13 = arith.constant 0.0263553709 : f32
    %38 = vector.broadcast %cst_13 : f32 to vector<16x128xf32>
    %39 = arith.addf %37, %38 : vector<16x128xf32>
    %40 = arith.mulf %39, %32 : vector<16x128xf32>
    %cst_14 = arith.constant -0.0205770601 : f32
    %41 = vector.broadcast %cst_14 : f32 to vector<16x128xf32>
    %42 = arith.addf %40, %41 : vector<16x128xf32>
    %43 = arith.mulf %42, %32 : vector<16x128xf32>
    %cst_15 = arith.constant 0.00916280969 : f32
    %44 = vector.broadcast %cst_15 : f32 to vector<16x128xf32>
    %45 = arith.addf %43, %44 : vector<16x128xf32>
    %46 = arith.mulf %45, %32 : vector<16x128xf32>
    %cst_16 = arith.constant -1.575650e-03 : f32
    %47 = vector.broadcast %cst_16 : f32 to vector<16x128xf32>
    %48 = arith.addf %46, %47 : vector<16x128xf32>
    %49 = arith.mulf %48, %32 : vector<16x128xf32>
    %cst_17 = arith.constant 2.253190e-03 : f32
    %50 = vector.broadcast %cst_17 : f32 to vector<16x128xf32>
    %51 = arith.addf %49, %50 : vector<16x128xf32>
    %52 = arith.mulf %51, %32 : vector<16x128xf32>
    %cst_18 = arith.constant 0.01328592 : f32
    %53 = vector.broadcast %cst_18 : f32 to vector<16x128xf32>
    %54 = arith.addf %52, %53 : vector<16x128xf32>
    %55 = arith.mulf %54, %32 : vector<16x128xf32>
    %cst_19 = arith.constant 0.398942292 : f32
    %56 = vector.broadcast %cst_19 : f32 to vector<16x128xf32>
    %57 = arith.addf %55, %56 : vector<16x128xf32>
    %58 = math.rsqrt %29 : vector<16x128xf32>
    %59 = arith.mulf %57, %58 : vector<16x128xf32>
    %cst_20 = arith.constant 3.750000e+00 : f32
    %60 = vector.broadcast %cst_20 : f32 to vector<16x128xf32>
    %61 = arith.cmpf olt, %1, %60 : vector<16x128xf32>
    %62 = arith.select %61, %27, %59 : vector<16x128xi1>, vector<16x128xf32>
    %c0_21 = arith.constant 0 : index
    %c0_22 = arith.constant 0 : index
    %63 = vector.load %arg2[%c0_21, %c0_22] : memref<16x128xf32, #tpu.memory_space<vmem>>, vector<16x128xf32>
    tpu.vector_store %arg2[%c0_21, %c0_22], %62 {strides = array<i32>} : memref<16x128xf32, #tpu.memory_space<vmem>>, vector<16x128xf32>,
    return
  }
  func.func @transform_0(%arg0: i32) -> (i32, i32) {
    %c0_i32 = arith.constant 0 : i32
    %c0_i32_0 = arith.constant 0 : i32
    return %arg0, %c0_i32 : i32, i32
  }
  func.func @transform_1(%arg0: i32) -> (i32, i32) {
    %c0_i32 = arith.constant 0 : i32
    %c0_i32_0 = arith.constant 0 : i32
    return %arg0, %c0_i32 : i32, i32
  }
}

</mosaic_0001>

<bundles_post_ra>
// kernel: tpu_custom_call.1
= control target key start
LH: loop header
LB: loop body
LE: loop exit
PB: predicated region body
PF: predicated region fallthrough
CT: control target
= control target key end

     0   :  { %6 = vsyncpa [#allocation3], 0  ;;  %s324_s0 = inlined_call_operand.hbm [shape: f32[16,128], index: 0, kind: input, shape index: {}]   ;;  %s325_s1 = inlined_call_operand.hbm [shape: f32[16,128], index: 1, kind: output, shape index: {}]  }
   0x1   :  { %7 = vsyncpa [#allocation4], 0  ;;  %s12_s8 = sshll.u32 %s324_s0, 4  ;;  %s218_s9 = smov [#allocation2]   ;;  %s13_s8 = int_to_ptr.hbm [resolvable:$true] %s12_s8 }
   0x2   :  { %s14_s10 = sshll.u32 %s218_s9, 4  ;;  %s219_s11 = smov 128   ;;  %s15_s10 = int_to_ptr.vmem [resolvable:$true] %s14_s10 }
   0x3   :  { %s220_s12 = smov 8  }
   0x4   :  { %20 = dma.hbm_to_vmem [thread:$0]  %s13_s8, 256, %s15_s10, [#allocation3], %s219_s11, %s219_s11, %s220_s12  }
   0x5   :  { %214 = dma.done.wait [#allocation3], 256  }
   0x6   :  { %215 = vsyncadd [#allocation3], 4294967040  ;;  %v25_v0 = vld [vmem:[#allocation2] sm:$0xff]  ;;  %v26_v1 = vld [vmem:[#allocation2 + $0x8] sm:$0xff]  ;;  %s221_s0 = smov [#allocation5]   ;;  %s137_s16 = sshll.u32 %s325_s1, 4  ;;  %s138_s16 = int_to_ptr.hbm [resolvable:$true] %s137_s16 }
   0x7   :  { %v238_v2 = vand.u32 2147483647, %v25_v0  ;;  %v240_v3 = vand.u32 2147483647, %v26_v1  ;;  %s135_s13 = sshll.u32 %s221_s0, 4  ;;  %s136_s13 = int_to_ptr.vmem [resolvable:$true] %s135_s13 }
   0x9   :  { %v29_v4 = vmul.f32 0.26666668, %v238_v2  ;;  %v244_v5 = vmax.f32 %v238_v2, 3.75  ;;  %v30_v6 = vmul.f32 0.26666668, %v240_v3  ;;  %v253_v9 = vmax.f32 %v240_v3, 3.75 }
   0xa   :  { %v57_v44 = vsub.f32 0.0, %v238_v2  ;;  %v58_v55 = vsub.f32 0.0, %v240_v3  ;;  %vm125_vm6 = vcmp.lt.f32.partialorder %v238_v2, 3.75  ;;  %vm126_vm7 = vcmp.lt.f32.partialorder %v240_v3, 3.75 }
   0xb   :  { %v247_v7 = vmul.f32 %v29_v4, %v29_v4  ;;  %154 = vrcp.f32 %v244_v5  ;;  %v250_v8 = vmul.f32 %v30_v6, %v30_v6  ;;  %vm109_vm0 = vweird.f32 %v244_v5 }
   0xc   :  { %156 = vrcp.f32 %v253_v9  ;;  %v59_v53 = vmul.f32 1.442695, %v57_v44  ;;  %v61_v0 = vmul.f32 1.442695, %v58_v55  ;;  %vm119_vm3 = vweird.f32 %v253_v9 }
   0xd   :  { %v33_v10 = vmul.f32 0.0045813, %v247_v7  ;;  %v34_v11 = vmul.f32 0.0045813, %v250_v8  ;;  %158 = vrsqrt.f32 %v244_v5 }
   0xe   :  { %160 = vrsqrt.f32 %v253_v9 }
   0xf   :  { %v35_v12 = vadd.f32 0.0360768, %v33_v10  ;;  %v36_v13 = vadd.f32 0.0360768, %v34_v11  ;;  %162 = vpow2.f32 %v59_v53 }
  0x10   :  { %164 = vpow2.f32 %v61_v0 }
  0x11   :  { %v155_v14 = vpop.eup %154  ;;  %v37_v15 = vmul.f32 %v35_v12, %v247_v7  ;;  %v38_v16 = vmul.f32 %v36_v13, %v250_v8 }
  0x12   :  { %v260_v17 = vmul.f32 3.75, %v155_v14  ;;  %v157_v21 = vpop.eup %156 }
  0x13   :  { %v39_v18 = vadd.f32 0.2659732, %v37_v15  ;;  %v40_v19 = vadd.f32 0.2659732, %v38_v16  ;;  %v266_v25 = vmul.f32 3.75, %v157_v21  ;;  %v271_v29 = vpop.eup %158 }
  0x14   :  { %v71_v20 = vmul.f32 0.00392377, %v260_v17  ;;  %v104_v36 = vmul.f32 %v271_v29, %v244_v5  ;;  %v278_v37 = vpop.eup %160  ;;  %vm110_vm1 = vweird.f32 %v271_v29 }
  0x15   :  { %v41_v22 = vmul.f32 %v39_v18, %v247_v7  ;;  %v42_v24 = vmul.f32 %v40_v19, %v250_v8  ;;  %v72_v28 = vmul.f32 0.00392377, %v266_v25  ;;  %v114_v46 = vmul.f32 %v278_v37, %v253_v9  ;;  %vm301_vm2 = vmor %vm109_vm0, %vm110_vm1  ;;  %v163_v5 = vpop.eup %162 }
  0x16   :  { %v73_v23 = vadd.f32 -0.01647633, %v71_v20  ;;  %v105_v45 = vmul.f32 %v271_v29, %v104_v36  ;;  %vm120_vm4 = vweird.f32 %v278_v37 }
  0x17   :  { %v43_v26 = vadd.f32 1.2067492, %v41_v22  ;;  %v44_v32 = vadd.f32 1.2067492, %v42_v24  ;;  %v74_v33 = vadd.f32 -0.01647633, %v72_v28  ;;  %v115_v56 = vmul.f32 %v278_v37, %v114_v46  ;;  %vm121_vm5 = vmor %vm119_vm3, %vm120_vm4 }
  0x18   :  { %v75_v27 = vmul.f32 %v73_v23, %v260_v17  ;;  %v106_v54 = vmul.f32 0.5, %v105_v45 }
  0x19   :  { %v45_v30 = vmul.f32 %v43_v26, %v247_v7  ;;  %v76_v35 = vmul.f32 %v74_v33, %v266_v25  ;;  %v46_v40 = vmul.f32 %v44_v32, %v250_v8  ;;  %v116_v1 = vmul.f32 0.5, %v115_v56 }
  0x1a   :  { %v77_v31 = vadd.f32 0.02635537, %v75_v27  ;;  %v107_v63 = vsub.f32 1.5, %v106_v54 }
  0x1b   :  { %v47_v38 = vadd.f32 3.0899425, %v45_v30  ;;  %v78_v41 = vadd.f32 0.02635537, %v76_v35  ;;  %v48_v49 = vadd.f32 3.0899425, %v46_v40  ;;  %v165_v30 = vpop.eup %164 }
  0x1c   :  { %v79_v34 = vmul.f32 %v77_v31, %v260_v17  ;;  %v108_v14 = vmul.f32 %v271_v29, %v107_v63  ;;  %v117_v15 = vsub.f32 1.5, %v116_v1 }
  0x1d   :  { %v80_v43 = vmul.f32 %v78_v41, %v266_v25  ;;  %v49_v47 = vmul.f32 %v47_v38, %v247_v7  ;;  %v50_v59 = vmul.f32 %v48_v49, %v250_v8 }
  0x1e   :  { %v81_v39 = vadd.f32 -0.02057706, %v79_v34  ;;  %v112_v23 = vsel %vm301_vm2, %v271_v29, %v108_v14  ;;  %v118_v24 = vmul.f32 %v278_v37, %v117_v15 }
  0x1f   :  { %v82_v50 = vadd.f32 -0.02057706, %v80_v43  ;;  %v51_v57 = vadd.f32 3.5156229, %v49_v47  ;;  %v52_v10 = vadd.f32 3.5156229, %v50_v59 }
  0x20   :  { %v83_v42 = vmul.f32 %v81_v39, %v260_v17 }
  0x21   :  { %v84_v52 = vmul.f32 %v82_v50, %v266_v25  ;;  %v53_v4 = vmul.f32 %v51_v57, %v247_v7  ;;  %v54_v7 = vmul.f32 %v52_v10, %v250_v8 }
  0x22   :  { %v85_v48 = vadd.f32 0.00916281, %v83_v42 }
  0x23   :  { %v86_v60 = vadd.f32 0.00916281, %v84_v52  ;;  %v55_v16 = vadd.f32 1.0, %v53_v4  ;;  %v56_v28 = vadd.f32 1.0, %v54_v7 }
  0x24   :  { %v87_v51 = vmul.f32 %v85_v48, %v260_v17 }
  0x25   :  { %v88_v62 = vmul.f32 %v86_v60, %v266_v25  ;;  %v63_v26 = vmul.f32 %v163_v5, %v55_v16  ;;  %v64_v33 = vmul.f32 %v165_v30, %v56_v28 }
  0x26   :  { %v89_v58 = vadd.f32 -0.00157565, %v87_v51 }
  0x27   :  { %v90_v11 = vadd.f32 -0.00157565, %v88_v62 }
  0x28   :  { %v91_v61 = vmul.f32 %v89_v58, %v260_v17 }
  0x29   :  { %v92_v13 = vmul.f32 %v90_v11, %v266_v25 }
  0x2a   :  { %v93_v6 = vadd.f32 0.00225319, %v91_v61 }
  0x2b   :  { %v94_v20 = vadd.f32 0.00225319, %v92_v13 }
  0x2c   :  { %v95_v12 = vmul.f32 %v93_v6, %v260_v17 }
  0x2d   :  { %v96_v22 = vmul.f32 %v94_v20, %v266_v25 }
  0x2e   :  { %v97_v18 = vadd.f32 0.01328592, %v95_v12 }
  0x2f   :  { %v98_v8 = vadd.f32 0.01328592, %v96_v22 }
  0x30   :  { %v99_v21 = vmul.f32 %v97_v18, %v260_v17  ;;  %v122_v17 = vsel %vm121_vm5, %v278_v37, %v118_v24 }
  0x31   :  { %v100_v31 = vmul.f32 %v98_v8, %v266_v25 }
  0x32   :  { %v101_v27 = vadd.f32 0.3989423, %v99_v21 }
  0x33   :  { %v102_v34 = vadd.f32 0.3989423, %v100_v31 }
  0x34   :  { %v123_v9 = vmul.f32 %v112_v23, %v101_v27 }
  0x35   :  { %v124_v29 = vmul.f32 %v122_v17, %v102_v34 }
  0x36   :  { %v127_v32 = vsel %vm125_vm6, %v63_v26, %v123_v9 }
  0x37   :  { %129 = vst [vmem:[#allocation5] sm:$0xff] %v127_v32  ;;  %v128_v2 = vsel %vm126_vm7, %v64_v33, %v124_v29 }
  0x38   :  { %130 = vst [vmem:[#allocation5 + $0x8] sm:$0xff] %v128_v2 }
  0x39   :  { %143 = dma.vmem_to_hbm [thread:$0]  %s136_s13, 256, %s138_s16, [#allocation4], %s219_s11, %s219_s11, %s220_s12  }
  0x3a   :  { %216 = dma.done.wait [#allocation4], 256  }
  0x3b   :  { %217 = vsyncadd [#allocation4], 4294967040 }
  0x3c   :  { %148 = vsyncpa [#allocation3], 1 }
  0x3d   :  { %149 = vsyncpa [#allocation4], 1 }

</bundles_post_ra>
